<compile_context>
chip_gen: v7x
topology: tpu7x:2x2x1
jax: 0.10.0
libtpu: 0.0.40
codegen_flags: <defaults>
</compile_context>

<pallas_src>
import functools

import jax
import jax.numpy as jnp
from jax import lax
from jax.experimental import pallas as pl
from jax.experimental.pallas import tpu as pltpu

_LANE = 128
_MIN_TILE_N = 128
_NEG_BIG = -1e30  # finite "minus infinity": exp() underflows to 0, no inf/nan math


def _round_up(x, m):
    return ((x + m - 1) // m) * m


def _round_down(x, m):
    return (x // m) * m


def _cdiv(a, b):
    return -(-a // b)


def _focal_loss_kernel(logits_ref, target_ref, out_ref, *scratch,
                       gamma, num_classes, tile_c, num_c_tiles, mask_c,
                       compute_dtype):
    """One (row-tile, class-tile) grid step.

    logits_ref : (tile_n, tile_c)  input dtype
    target_ref : (tile_n, 1)       int32
    out_ref    : (1, tile_n)       float32 (lane-dense per-row loss)
    scratch    : () for a single pass over C, or 3 x (tile_n, 1) f32 running
                 (max, sum-exp, target-logit) accumulators when C is tiled.
    """
    k = pl.program_id(1)

    x = logits_ref[...].astype(compute_dtype)            # (TN, TC)
    t = target_ref[...]                                   # (TN, 1) int32
    tile_n = x.shape[0]

    col = lax.broadcasted_iota(jnp.int32, x.shape, 1)
    if num_c_tiles > 1:
        col = col + k * tile_c
    if mask_c:
        # Last class block overruns C: neutralise out-of-range lanes.
        x = jnp.where(col < num_classes, x, _NEG_BIG)

    # Per-row statistics of this class block (accumulated in f32).
    local_max = jnp.max(x, axis=-1, keepdims=True).astype(jnp.float32)   # (TN,1)
    xt_blk = jnp.sum(jnp.where(col == t, x, 0).astype(jnp.float32),
                     axis=-1, keepdims=True)                              # (TN,1)

    if num_c_tiles == 1:
        # Single pass over all classes: no online rescaling, no scratch.
        m_fin = local_max
        s = x - local_max.astype(compute_dtype)
        se_fin = jnp.sum(jnp.exp(s).astype(jnp.float32), axis=-1, keepdims=True)
        xt_fin = xt_blk
    else:
        m_scr, se_scr, xt_scr = scratch

        @pl.when(k == 0)
        def _init():
            m_scr[...] = jnp.full(m_scr.shape, _NEG_BIG, jnp.float32)
            se_scr[...] = jnp.zeros(se_scr.shape, jnp.float32)
            xt_scr[...] = jnp.zeros(xt_scr.shape, jnp.float32)

        m_prev = m_scr[...]
        m_new = jnp.maximum(m_prev, local_max)
        s = x - m_new.astype(compute_dtype)
        blk_sum = jnp.sum(jnp.exp(s).astype(jnp.float32), axis=-1, keepdims=True)
        alpha = jnp.exp(m_prev - m_new)            # rescale the running sum-exp
        se_new = se_scr[...] * alpha + blk_sum
        xt_new = xt_scr[...] + xt_blk
        m_scr[...] = m_new
        se_scr[...] = se_new
        xt_scr[...] = xt_new
        m_fin, se_fin, xt_fin = m_new, se_new, xt_new

    def _finalize():
        # log prob of the target class, still as a (TN, 1) column.
        lse = m_fin + jnp.log(se_fin)
        lp_col = xt_fin - lse                                      # (TN, 1)
        # Lane-densify once: (TN,1) column -> (1,TN) row via lane broadcast +
        # 2-D transpose, so the focal exp/pow run on dense vregs and the output
        # store is an unmasked vst.
        lp_row = jnp.transpose(jnp.broadcast_to(lp_col, (tile_n, _LANE)))[0:1, :]
        lp_row = jnp.minimum(lp_row, 0.0)          # guard against +eps rounding
        p = jnp.exp(lp_row)
        one_minus_p = jnp.maximum(1.0 - p, 0.0)    # keep pow() away from negatives
        g = float(gamma)
        if g == int(g) and g >= 0.0:
            mod = jnp.ones_like(one_minus_p)
            for _ in range(int(g)):                # gamma=2 default: two VPU muls
                mod = mod * one_minus_p
        else:
            mod = one_minus_p ** g
        out_ref[...] = -(mod * lp_row)

    if num_c_tiles == 1:
        _finalize()
    else:
        pl.when(k == num_c_tiles - 1)(_finalize)


def _compute_dtype_for(in_dtype):
    """bf16 stays bf16 for the (rows, classes) elementwise work on bf16-VPU parts."""
    if jnp.dtype(in_dtype) == jnp.dtype(jnp.bfloat16):
        try:
            kind = jax.devices()[0].device_kind.lower()
        except Exception:
            kind = ""
        if ("v6" in kind) or ("v7" in kind):
            return jnp.bfloat16
    return jnp.float32


def _vmem_limit_bytes():
    try:
        cap = int(pltpu.get_tpu_info().vmem_capacity_bytes)
    except Exception:
        cap = 64 * 1024 * 1024
    # Clamp to the per-TensorCore ceiling of the smallest part (v7x: 64 MiB) so a
    # chip-level report on dual-core parts can never overshoot physical VMEM.
    cap = min(cap, 64 * 1024 * 1024)
    return (cap * 3) // 4                      # headroom for Mosaic internals


def _per_row_vmem_bytes(tile_c, in_itemsize, compute_itemsize):
    c_lanes = max(_LANE, _round_up(tile_c, _LANE))       # lane padding of (TN,C) tiles
    full_width = c_lanes * (2 * in_itemsize              # double-buffered logits block
                            + 2 * compute_itemsize       # shifted-logits / exp temps
                            + 4 + 1)                     # int32 iota + mask temp
    narrow = 12 * _LANE * 4                              # (TN,1)/(TN,128) stats, scratch, relayout
    return full_width + narrow


def _choose_tiling(n_rows, n_classes, in_itemsize, compute_itemsize):
    vmem_limit = _vmem_limit_bytes()
    tile_budget = (vmem_limit * 4) // 5

    # Classes per grid step: single pass over C when it fits at the minimum row
    # tile, otherwise give C its own grid axis (online logsumexp).
    tile_c = n_classes
    if _per_row_vmem_bytes(n_classes, in_itemsize, compute_itemsize) * _MIN_TILE_N > tile_budget:
        a = 2 * in_itemsize + 2 * compute_itemsize + 5
        b = 12 * _LANE * 4
        c_lanes_max = (tile_budget // _MIN_TILE_N - b) // a
        tile_c = max(_LANE, _round_down(int(c_lanes_max), _LANE))

    # Rows per grid step: as many as the budget allows (amortises the ~0.35us
    # per-step pipeline overhead), kept a multiple of 128 for the lane-dense
    # output block and the (tile_n, 128) transpose relayout.
    per_row = _per_row_vmem_bytes(tile_c, in_itemsize, compute_itemsize)
    tile_n = max(_MIN_TILE_N, min(tile_budget // per_row, 8192))
    tile_n = _round_down(tile_n, _MIN_TILE_N)

    n_pad_full = _round_up(max(n_rows, 1), _MIN_TILE_N)
    if tile_n >= n_pad_full:
        # Whole problem fits in one row tile.  Split in two only if each half
        # still moves a multi-MiB block (second "parallel" step for dual-core
        # parts); single-core parts would only pay an extra pipeline boundary.
        half = _round_up(n_pad_full // 2, _MIN_TILE_N)
        if (half >= _MIN_TILE_N and half < n_pad_full
                and half * min(tile_c, n_classes) * in_itemsize >= 2 * 1024 * 1024):
            tile_n = half
        else:
            tile_n = n_pad_full
    return tile_n, tile_c, vmem_limit


def focal_loss(logits, targets, gamma=2.0, weight=None, reduction="none",
               tile_n=None, tile_c=None):
    """logits: (N, C) float (f32 or bf16); targets: (N,) int.  Per-sample loss."""
    if weight is not None:
        # TODO(synk): per-class weights (F.nll_loss weight=) are not implemented.
        raise NotImplementedError("focal_loss: weight is not supported")
    if logits.ndim != 2:
        raise ValueError("focal_loss expects (N, C) logits")

    n_rows, n_classes = logits.shape
    in_itemsize = jnp.dtype(logits.dtype).itemsize
    compute_dtype = _compute_dtype_for(logits.dtype)
    compute_itemsize = jnp.dtype(compute_dtype).itemsize

    auto_tile_n, auto_tile_c, vmem_limit = _choose_tiling(
        n_rows, n_classes, in_itemsize, compute_itemsize)
    tile_n = auto_tile_n if tile_n is None else max(
        _MIN_TILE_N, _round_down(int(tile_n), _MIN_TILE_N))
    tile_c = auto_tile_c if tile_c is None else int(tile_c)

    # Class-axis bookkeeping (tile_c must be lane-aligned when C is tiled).
    if tile_c < n_classes:
        tile_c = max(_LANE, _round_down(tile_c, _LANE))
    if tile_c >= n_classes:
        tile_c = n_classes
        num_c_tiles = 1
    else:
        num_c_tiles = _cdiv(n_classes, tile_c)
    mask_c = num_c_tiles * tile_c > n_classes

    num_row_tiles = _cdiv(n_rows, tile_n)
    n_pad = num_row_tiles * tile_n

    targets_i32 = targets.astype(jnp.int32)
    if n_pad != n_rows:
        logits = jnp.pad(logits, ((0, n_pad - n_rows), (0, 0)))
        targets_i32 = jnp.pad(targets_i32, (0, n_pad - n_rows))
    targets_2d = targets_i32.reshape(n_pad, 1)

    kernel = functools.partial(
        _focal_loss_kernel,
        gamma=float(gamma), num_classes=n_classes, tile_c=tile_c,
        num_c_tiles=num_c_tiles, mask_c=mask_c, compute_dtype=compute_dtype)

    scratch_shapes = []
    if num_c_tiles > 1:
        scratch_shapes = [pltpu.VMEM((tile_n, 1), jnp.float32),
                          pltpu.VMEM((tile_n, 1), jnp.float32),
                          pltpu.VMEM((tile_n, 1), jnp.float32)]

    out = pl.pallas_call(
        kernel,
        out_shape=jax.ShapeDtypeStruct((1, n_pad), jnp.float32),
        grid_spec=pltpu.PrefetchScalarGridSpec(
            num_scalar_prefetch=0,
            grid=(num_row_tiles, num_c_tiles),
            in_specs=[
                pl.BlockSpec((tile_n, tile_c), lambda i, k: (i, k)),
                pl.BlockSpec((tile_n, 1), lambda i, k: (i, 0)),
            ],
            out_specs=pl.BlockSpec((1, tile_n), lambda i, k: (0, i)),
            scratch_shapes=scratch_shapes,
        ),
        compiler_params=pltpu.CompilerParams(
            dimension_semantics=("parallel", "arbitrary"),
            vmem_limit_bytes=int(vmem_limit),
        ),
    )(logits, targets_2d)

    loss = out[0, :n_rows]
    if reduction == "mean":
        return jnp.mean(loss)
    if reduction == "sum":
        return jnp.sum(loss)
    return loss


def _reference(logits, targets, gamma):
    log_prob = jax.nn.log_softmax(logits.astype(jnp.float32), axis=-1)
    prob = jnp.exp(log_prob)
    focal = ((1.0 - prob) ** gamma) * log_prob
    return -jnp.take_along_axis(focal, targets[:, None], axis=-1)[:, 0]


if __name__ == "__main__":
    key = jax.random.PRNGKey(0)
    keys = jax.random.split(key, 8)

    def _check(logits, targets, gamma=2.0, **kw):
        got = jax.block_until_ready(focal_loss(logits, targets, gamma=gamma, **kw))
        want = _reference(logits, targets, gamma)
        assert got.shape == want.shape, (got.shape, want.shape)
        assert jnp.allclose(got, want, atol=2e-5, rtol=2e-5), (got, want)

    # 1) aligned rows, small class count (single pass over C).
    logits1 = jax.random.normal(keys[0], (16, 32), dtype=jnp.float32)
    targets1 = jax.random.randint(keys[1], (16,), 0, 32, dtype=jnp.int32)
    _check(logits1, targets1)

    # 2) ragged rows (exercises the pad-and-slice path).
    logits2 = jax.random.normal(keys[2], (13, 40), dtype=jnp.float32)
    targets2 = jax.random.randint(keys[3], (13,), 0, 40, dtype=jnp.int32)
    _check(logits2, targets2)

    # 3) several row tiles (lane-dense output blocks across the grid).
    logits3 = jax.random.normal(keys[4], (300, 64), dtype=jnp.float32)
    targets3 = jax.random.randint(keys[5], (300,), 0, 64, dtype=jnp.int32)
    _check(logits3, targets3, tile_n=128)

    # 4) class-tiled online-logsumexp path (large-C guard), forced small here.
    logits4 = jax.random.normal(keys[6], (64, 256), dtype=jnp.float32)
    targets4 = jax.random.randint(keys[7], (64,), 0, 256, dtype=jnp.int32)
    _check(logits4, targets4, tile_c=128)

    print("KERNEL_OK")
</pallas_src>

<mosaic_0001>
module attributes {stable_mosaic.version = 11 : i64} {
  func.func @_focal_loss_kernel(%arg0: i32, %arg1: i32, %arg2: memref<128x32xf32, #tpu.memory_space<vmem>>, %arg3: memref<128x1xi32, #tpu.memory_space<vmem>>, %arg4: memref<1x128xf32, #tpu.memory_space<vmem>>) attributes {dimension_semantics = [#tpu.dimension_semantics<parallel>, #tpu.dimension_semantics<arbitrary>], iteration_bounds = array<i64: 1, 1>, scalar_prefetch = 0 : i64, scratch_operands = 0 : i64, tpu.core_type = #tpu.core_type<tc>, window_params = [{transform_indices = @transform_0, window_bounds = array<i64: 128, 32>}, {transform_indices = @transform_1, window_bounds = array<i64: 128, 1>}, {transform_indices = @transform_2, window_bounds = array<i64: 1, 128>}]} {
    %c0 = arith.constant 0 : index
    %c0_0 = arith.constant 0 : index
    %0 = vector.load %arg2[%c0, %c0_0] : memref<128x32xf32, #tpu.memory_space<vmem>>, vector<128x32xf32>
    %c0_1 = arith.constant 0 : index
    %c0_2 = arith.constant 0 : index
    %1 = vector.load %arg3[%c0_1, %c0_2] : memref<128x1xi32, #tpu.memory_space<vmem>>, vector<128x1xi32>
    %2 = tpu.iota {dimensions = array<i32: 1>} : vector<128x32xi32>
    %cst = arith.constant dense<0xFF800000> : vector<128xf32>
    %3 = vector.multi_reduction <maximumf>, %0, %cst [1] : vector<128x32xf32> to vector<128xf32>
    %4 = vector.shape_cast %3 : vector<128xf32> to vector<128x1xf32>
    %5 = vector.broadcast %1 : vector<128x1xi32> to vector<128x32xi32>
    %6 = arith.cmpi eq, %2, %5 : vector<128x32xi32>
    %c0_i32 = arith.constant 0 : i32
    %7 = arith.sitofp %c0_i32 : i32 to f32
    %8 = vector.broadcast %7 : f32 to vector<128x32xf32>
    %9 = arith.select %6, %0, %8 : vector<128x32xi1>, vector<128x32xf32>
    %cst_3 = arith.constant dense<0.000000e+00> : vector<128xf32>
    %10 = vector.multi_reduction <add>, %9, %cst_3 [1] : vector<128x32xf32> to vector<128xf32>
    %11 = vector.shape_cast %10 : vector<128xf32> to vector<128x1xf32>
    %12 = vector.broadcast %4 : vector<128x1xf32> to vector<128x32xf32>
    %13 = arith.subf %0, %12 : vector<128x32xf32>
    %14 = math.exp %13 : vector<128x32xf32>
    %cst_4 = arith.constant dense<0.000000e+00> : vector<128xf32>
    %15 = vector.multi_reduction <add>, %14, %cst_4 [1] : vector<128x32xf32> to vector<128xf32>
    %16 = vector.shape_cast %15 : vector<128xf32> to vector<128x1xf32>
    %17 = math.log %16 : vector<128x1xf32>
    %18 = arith.addf %4, %17 : vector<128x1xf32>
    %19 = arith.subf %11, %18 : vector<128x1xf32>
    %20 = vector.shape_cast %19 : vector<128x1xf32> to vector<128x1xf32>
    %21 = vector.broadcast %20 : vector<128x1xf32> to vector<128x128xf32>
    %22 = tpu.transpose %21, [1, 0] : vector<128x128xf32> -> vector<128x128xf32>
    %23 = vector.extract_strided_slice %22 {offsets = [0, 0], sizes = [1, 128], strides = [1, 1]} : vector<128x128xf32> to vector<1x128xf32>
    %cst_5 = arith.constant 0.000000e+00 : f32
    %24 = vector.broadcast %cst_5 : f32 to vector<1x128xf32>
    %25 = arith.minimumf %23, %24 : vector<1x128xf32>
    %26 = math.exp %25 : vector<1x128xf32>
    %cst_6 = arith.constant 1.000000e+00 : f32
    %27 = vector.broadcast %cst_6 : f32 to vector<1x128xf32>
    %28 = arith.subf %27, %26 : vector<1x128xf32>
    %cst_7 = arith.constant 0.000000e+00 : f32
    %29 = vector.broadcast %cst_7 : f32 to vector<1x128xf32>
    %30 = arith.maximumf %28, %29 : vector<1x128xf32>
    %cst_8 = arith.constant 1.000000e+00 : f32
    %31 = vector.broadcast %cst_8 : f32 to vector<1x128xf32>
    %32 = arith.mulf %31, %30 : vector<1x128xf32>
    %33 = arith.mulf %32, %30 : vector<1x128xf32>
    %34 = arith.mulf %33, %25 : vector<1x128xf32>
    %cst_9 = arith.constant 0.000000e+00 : f32
    %35 = vector.broadcast %cst_9 : f32 to vector<1x128xf32>
    %36 = arith.subf %35, %34 : vector<1x128xf32>
    %c0_10 = arith.constant 0 : index
    %c0_11 = arith.constant 0 : index
    %37 = vector.load %arg4[%c0_10, %c0_11] : memref<1x128xf32, #tpu.memory_space<vmem>>, vector<1x128xf32>
    tpu.vector_store %arg4[%c0_10, %c0_11], %36 {strides = array<i32>} : memref<1x128xf32, #tpu.memory_space<vmem>>, vector<1x128xf32>,
    return
  }
  func.func @transform_0(%arg0: i32, %arg1: i32) -> (i32, i32) {
    %c0_i32 = arith.constant 0 : i32
    return %arg0, %arg1 : i32, i32
  }
  func.func @transform_1(%arg0: i32, %arg1: i32) -> (i32, i32) {
    %c0_i32 = arith.constant 0 : i32
    %c0_i32_0 = arith.constant 0 : i32
    return %arg0, %c0_i32 : i32, i32
  }
  func.func @transform_2(%arg0: i32, %arg1: i32) -> (i32, i32) {
    %c0_i32 = arith.constant 0 : i32
    %c0_i32_0 = arith.constant 0 : i32
    return %c0_i32, %arg0 : i32, i32
  }
}

</mosaic_0001>

<bundles_post_ra>
// kernel: tpu_custom_call.1
= control target key start
LH: loop header
LB: loop body
LE: loop exit
PB: predicated region body
PF: predicated region fallthrough
CT: control target
= control target key end

     0   :  { %vm46_vm0 = vcmask 261120   ;;  %v532_v6 = vmov 0   ;;  %s867_s0 = inlined_call_operand.vmem [shape: f32[128,32], index: 0, kind: input, shape index: {}]   ;;  %s868_s1 = inlined_call_operand.vmem [shape: s32[128,1], index: 1, kind: input, shape index: {}]   ;;  %s869_s2 = inlined_call_operand.hbm [shape: f32[1,128], index: 2, kind: output, shape index: {}]  }
   0x1   :  { %v552_v0 = vld [vmem:[%s867_s0 + $0x10] sm:$0xff]  ;;  %v557_v1 = vld [vmem:[%s867_s0] sm:$0xff]  ;;  %v562_v2 = vld [vmem:[%s867_s0 + $0x18] sm:$0xff]  ;;  %441 = vset.pattern.permute.xlu1 %v532_v6  ;;  %440 = vset.pattern.permute.xlu0 %v532_v6 }
   0x2   :  { %v53_v3 = vsel %vm46_vm0, %v552_v0, -inf  ;;  %v47_v4 = vsel %vm46_vm0, %v557_v1, -inf  ;;  %v571_v5 = vld [vmem:[%s867_s0 + $0x8] sm:$0xff]  ;;  %v56_v7 = vsel %vm46_vm0, %v562_v2, -inf  ;;  %v585_v10 = vld [vmem:[%s867_s0 + $0x20] sm:$0xff]  ;;  %v594_v13 = vld [vmem:[%s867_s0 + $0x38] sm:$0xff] }
   0x3   :  { %54 = vmax.xlane.f32.xlu1 %v53_v3  ;;  %48 = vmax.xlane.f32.xlu0 %v47_v4  ;;  %v50_v8 = vsel %vm46_vm0, %v571_v5, -inf  ;;  %v580_v9 = vld [vmem:[%s867_s0 + $0x28] sm:$0xff]  ;;  %v59_v12 = vsel %vm46_vm0, %v585_v10, -inf  ;;  %v599_v14 = vld [vmem:[%s867_s0 + $0x30] sm:$0xff] }
   0x4   :  { %v62_v11 = vsel %vm46_vm0, %v580_v9, -inf }
   0x7   :  { %57 = vmax.xlane.f32.xlu1 %v56_v7  ;;  %51 = vmax.xlane.f32.xlu0 %v50_v8 }
   0xb   :  { %63 = vmax.xlane.f32.xlu1 %v62_v11  ;;  %60 = vmax.xlane.f32.xlu0 %v59_v12 }
   0xc   :  { %7 = vsyncpa [#allocation3], 0  ;;  %v68_v15 = vsel %vm46_vm0, %v594_v13, -inf  ;;  %v65_v16 = vsel %vm46_vm0, %v599_v14, -inf  ;;  %v608_v17 = vld [vmem:[%s867_s0 + $0x48] sm:$0xff]  ;;  %v613_v18 = vld [vmem:[%s867_s0 + $0x40] sm:$0xff] }
   0xd   :  { %v74_v19 = vsel %vm46_vm0, %v608_v17, -inf  ;;  %v71_v20 = vsel %vm46_vm0, %v613_v18, -inf  ;;  %v622_v21 = vld [vmem:[%s867_s0 + $0x58] sm:$0xff]  ;;  %v627_v22 = vld [vmem:[%s867_s0 + $0x50] sm:$0xff]  ;;  %v636_v25 = vld [vmem:[%s867_s0 + $0x68] sm:$0xff] }
   0xe   :  { %v80_v23 = vsel %vm46_vm0, %v622_v21, -inf  ;;  %v77_v24 = vsel %vm46_vm0, %v627_v22, -inf  ;;  %v641_v26 = vld [vmem:[%s867_s0 + $0x60] sm:$0xff]  ;;  %v86_v27 = vsel %vm46_vm0, %v636_v25, -inf  ;;  %v650_v29 = vld [vmem:[%s867_s0 + $0x78] sm:$0xff]  ;;  %v655_v30 = vld [vmem:[%s867_s0 + $0x70] sm:$0xff] }
   0xf   :  { %69 = vmax.xlane.f32.xlu1 %v68_v15  ;;  %66 = vmax.xlane.f32.xlu0 %v65_v16  ;;  %v83_v28 = vsel %vm46_vm0, %v641_v26, -inf  ;;  %v92_v31 = vsel %vm46_vm0, %v650_v29, -inf  ;;  %v89_v32 = vsel %vm46_vm0, %v655_v30, -inf  ;;  %v29_v33 = vld [vmem:[%s868_s1 + $0x8] sm:$0xff]  ;;  %v30_v34 = vld [vmem:[%s868_s1 + $0x10] sm:$0xff]  ;;  %v28_v35 = vld [vmem:[%s868_s1] sm:$0xff] }
  0x10   :  { %v31_v36 = vld [vmem:[%s868_s1 + $0x18] sm:$0xff]  ;;  %v37_v37 = vld [vmem:[%s868_s1 + $0x48] sm:$0xff]  ;;  %v32_v38 = vld [vmem:[%s868_s1 + $0x20] sm:$0xff] }
  0x11   :  { %v39_v39 = vld [vmem:[%s868_s1 + $0x58] sm:$0xff]  ;;  %v33_v40 = vld [vmem:[%s868_s1 + $0x28] sm:$0xff]  ;;  %v34_v42 = vld [vmem:[%s868_s1 + $0x30] sm:$0xff] }
  0x12   :  { %v41_v41 = vld [vmem:[%s868_s1 + $0x68] sm:$0xff]  ;;  %v43_v43 = vld [vmem:[%s868_s1 + $0x78] sm:$0xff]  ;;  %v36_v45 = vld [vmem:[%s868_s1 + $0x40] sm:$0xff] }
  0x13   :  { %75 = vmax.xlane.f32.xlu1 %v74_v19  ;;  %72 = vmax.xlane.f32.xlu0 %v71_v20  ;;  %v35_v44 = vld [vmem:[%s868_s1 + $0x38] sm:$0xff]  ;;  %v38_v46 = vld [vmem:[%s868_s1 + $0x50] sm:$0xff]  ;;  %v40_v47 = vld [vmem:[%s868_s1 + $0x60] sm:$0xff] }
  0x14   :  { %v42_v48 = vld [vmem:[%s868_s1 + $0x70] sm:$0xff]  ;;  %s533_s1 = smov [#allocation2]  }
  0x15   :  { %s430_s16 = sshll.u32 %s533_s1, 4  ;;  %s431_s16 = int_to_ptr.vmem [resolvable:$true] %s430_s16 }
  0x16   :  { %s508_s0 = scalar_lea.vmem %s431_s16, 16  ;;  %s512_s17 = scalar_lea.vmem %s431_s16, 32 }
  0x17   :  { %81 = vmax.xlane.f32.xlu1 %v80_v23  ;;  %78 = vmax.xlane.f32.xlu0 %v77_v24  ;;  %p509_p0 = scmp.ne.s32.totalorder %s431_s16, %s508_s0  ;;  %p513_p1 = scmp.lt.s32.totalorder %s431_s16, %s431_s16 }
  0x18   :  { %p514_p2 = scmp.lt.s32.totalorder %s512_s17, %s508_s0 }
  0x1a   :  { %p515_p3 = por %p514_p2, %p513_p1 }
  0x1b   :  { %87 = vmax.xlane.f32.xlu1 %v86_v27  ;;  %84 = vmax.xlane.f32.xlu0 %v83_v28 }
  0x1c   :  { %p516_p4 = pnand %p515_p3, %p509_p0 }
  0x1f   :  { %93 = vmax.xlane.f32.xlu1 %v92_v31  ;;  %90 = vmax.xlane.f32.xlu0 %v89_v32 }
  0x30   :  { %99 = vperm.xlu1 %441, %v29_v33  }
  0x34   :  { %102 = vperm.xlu1 %441, %v30_v34  }
  0x35   :  { %96 = vperm.xlu0 %440, %v28_v35  }
  0x38   :  { %105 = vperm.xlu1 %441, %v31_v36  }
  0x39   :  { %123 = vperm.xlu0 %440, %v37_v37  }
  0x3c   :  { %108 = vperm.xlu1 %441, %v32_v38  }
  0x3d   :  { %129 = vperm.xlu0 %440, %v39_v39  }
  0x40   :  { %111 = vperm.xlu1 %441, %v33_v40  }
  0x41   :  { %135 = vperm.xlu0 %440, %v41_v41   ;;  %v44_v41 = vlaneseq }
  0x44   :  { %114 = vperm.xlu1 %441, %v34_v42  }
  0x45   :  { %141 = vperm.xlu0 %440, %v43_v43  }
  0x48   :  { %117 = vperm.xlu1 %441, %v35_v44  }
  0x4c   :  { %120 = vperm.xlu1 %441, %v36_v45  }
  0x50   :  { %126 = vperm.xlu1 %441, %v38_v46  }
  0x54   :  { %132 = vperm.xlu1 %441, %v40_v47  }
  0x58   :  { %138 = vperm.xlu1 %441, %v42_v48   ;;  %v765_v48 = vand.u32 127, %v44_v41 }
  0x90   :  { %v709_v49 = vpop.xlane.xlu1 %54  ;;  %v711_v50 = vpop.xlane.xlu0 %48 }
  0x91   :  { %v223_v51 = vsub.f32 %v557_v1, %v711_v50 }
  0x93   :  { %v239_v52 = vmul.f32 1.442695, %v223_v51 }
  0x94   :  { %v715_v53 = vpop.xlane.xlu1 %57  ;;  %v717_v54 = vpop.xlane.xlu0 %51 }
  0x95   :  { %v226_v55 = vsub.f32 %v562_v2, %v715_v53  ;;  %442 = vpow2.f32 %v239_v52 }
  0x97   :  { %v245_v56 = vmul.f32 1.442695, %v226_v55 }
  0x98   :  { %v721_v57 = vpop.xlane.xlu1 %63  ;;  %v723_v58 = vpop.xlane.xlu0 %60 }
  0x99   :  { %444 = vpow2.f32 %v245_v56  ;;  %v228_v59 = vsub.f32 %v580_v9, %v721_v57 }
  0x9b   :  { %v249_v60 = vmul.f32 1.442695, %v228_v59 }
  0x9c   :  { %v727_v61 = vpop.xlane.xlu1 %69  ;;  %v729_v62 = vpop.xlane.xlu0 %66 }
  0x9d   :  { %446 = vpow2.f32 %v249_v60  ;;  %v230_v63 = vsub.f32 %v594_v13, %v727_v61 }
  0x9f   :  { %v253_v3 = vmul.f32 1.442695, %v230_v63  ;;  %v443_v4 = vpop.eup %442 }
  0xa0   :  { %v733_v6 = vpop.xlane.xlu1 %75  ;;  %v735_v7 = vpop.xlane.xlu0 %72  ;;  %v271_v12 = vsel %vm46_vm0, %v443_v4, 0.0 }
  0xa1   :  { %448 = vpow2.f32 %v253_v3  ;;  %v232_v8 = vsub.f32 %v608_v17, %v733_v6  ;;  %v231_v11 = vsub.f32 %v613_v18, %v735_v7  ;;  %272 = vadd.xlane.f32.xlu1 %v271_v12 }
  0xa3   :  { %v445_v15 = vpop.eup %444  ;;  %v257_v16 = vmul.f32 1.442695, %v232_v8  ;;  %v255_v19 = vmul.f32 1.442695, %v231_v11 }
  0xa4   :  { %v742_v20 = vpop.xlane.xlu1 %81  ;;  %v744_v23 = vpop.xlane.xlu0 %78  ;;  %v280_v24 = vsel %vm46_vm0, %v445_v15, 0.0 }
  0xa5   :  { %450 = vpow2.f32 %v257_v16  ;;  %v233_v27 = vsub.f32 %v627_v22, %v744_v23  ;;  %v234_v28 = vsub.f32 %v622_v21, %v742_v20  ;;  %281 = vadd.xlane.f32.xlu1 %v280_v24 }
  0xa6   :  { %452 = vpow2.f32 %v255_v19 }
  0xa7   :  { %v447_v31 = vpop.eup %446  ;;  %v259_v32 = vmul.f32 1.442695, %v233_v27  ;;  %v261_v36 = vmul.f32 1.442695, %v234_v28 }
  0xa8   :  { %v751_v33 = vpop.xlane.xlu1 %87  ;;  %v286_v34 = vsel %vm46_vm0, %v447_v31, 0.0  ;;  %v754_v35 = vpop.xlane.xlu0 %84 }
  0xa9   :  { %287 = vadd.xlane.f32.xlu1 %v286_v34  ;;  %454 = vpow2.f32 %v259_v32  ;;  %v235_v38 = vsub.f32 %v641_v26, %v754_v35  ;;  %v236_v44 = vsub.f32 %v636_v25, %v751_v33  ;;  %v224_v34 = vsub.f32 %v571_v5, %v717_v54 }
  0xaa   :  { %456 = vpow2.f32 %v261_v36 }
  0xab   :  { %v449_v37 = vpop.eup %448  ;;  %v263_v45 = vmul.f32 1.442695, %v235_v38  ;;  %v265_v55 = vmul.f32 1.442695, %v236_v44 }
  0xac   :  { %v758_v39 = vpop.xlane.xlu1 %93  ;;  %v292_v40 = vsel %vm46_vm0, %v449_v37, 0.0  ;;  %v763_v46 = vpop.xlane.xlu0 %90 }
  0xad   :  { %293 = vadd.xlane.f32.xlu1 %v292_v40  ;;  %458 = vpow2.f32 %v263_v45  ;;  %v237_v56 = vsub.f32 %v655_v30, %v763_v46  ;;  %v238_v12 = vsub.f32 %v650_v29, %v758_v39 }
  0xae   :  { %460 = vpow2.f32 %v265_v55 }
  0xaf   :  { %v451_v42 = vpop.eup %450  ;;  %v267_v15 = vmul.f32 1.442695, %v237_v56  ;;  %v269_v27 = vmul.f32 1.442695, %v238_v12 }
  0xb0   :  { %v453_v43 = vpop.eup %452  ;;  %v100_v47 = vpop.permute.xlu1 %99  ;;  %v298_v52 = vsel %vm46_vm0, %v451_v42, 0.0  ;;  %v225_v42 = vsub.f32 %v552_v0, %v709_v49 }
  0xb1   :  { %v295_v51 = vsel %vm46_vm0, %v453_v43, 0.0  ;;  %vm144_vm1 = vcmp.eq.s32.totalorder %v765_v48, %v100_v47  ;;  %462 = vpow2.f32 %v267_v15  ;;  %v241_v43 = vmul.f32 1.442695, %v224_v34 }
  0xb2   :  { %296 = vadd.xlane.f32.xlu1 %v295_v51  ;;  %v160_v4 = vsel %vm144_vm1, %v571_v5, 0.0  ;;  %464 = vpow2.f32 %v269_v27  ;;  %v243_v51 = vmul.f32 1.442695, %v225_v42 }
  0xb3   :  { %v455_v63 = vpop.eup %454  ;;  %v178_v24 = vsel %vm46_vm0, %v160_v4, 0.0  ;;  %466 = vpow2.f32 %v241_v43  ;;  %v229_v4 = vsub.f32 %v599_v14, %v729_v62 }
  0xb4   :  { %v103_v59 = vpop.permute.xlu1 %102  ;;  %v97_v60 = vpop.permute.xlu0 %96  ;;  %v301_v19 = vsel %vm46_vm0, %v455_v63, 0.0  ;;  %468 = vpow2.f32 %v243_v51 }
  0xb5   :  { %vm143_vm2 = vcmp.eq.s32.totalorder %v765_v48, %v97_v60  ;;  %v457_v11 = vpop.eup %456  ;;  %vm145_vm3 = vcmp.eq.s32.totalorder %v765_v48, %v103_v59 }
  0xb6   :  { %299 = vadd.xlane.f32.xlu1 %v298_v52  ;;  %v159_v3 = vsel %vm143_vm2, %v557_v1, 0.0  ;;  %v304_v1 = vsel %vm46_vm0, %v457_v11, 0.0  ;;  %v161_v31 = vsel %vm145_vm3, %v552_v0, 0.0  ;;  %v227_v52 = vsub.f32 %v585_v10, %v723_v58 }
  0xb7   :  { %v175_v8 = vsel %vm46_vm0, %v159_v3, 0.0  ;;  %v459_v32 = vpop.eup %458  ;;  %v181_v36 = vsel %vm46_vm0, %v161_v31, 0.0  ;;  %v251_v11 = vmul.f32 1.442695, %v229_v4 }
  0xb8   :  { %v106_v16 = vpop.permute.xlu1 %105  ;;  %176 = vadd.xlane.f32.xlu0 %v175_v8  ;;  %v307_v40 = vsel %vm46_vm0, %v459_v32, 0.0  ;;  %v461_v41 = vpop.eup %460  ;;  %v247_v3 = vmul.f32 1.442695, %v227_v52 }
  0xb9   :  { %vm146_vm4 = vcmp.eq.s32.totalorder %v765_v48, %v106_v16  ;;  %v124_v44 = vpop.permute.xlu0 %123 }
  0xba   :  { %302 = vadd.xlane.f32.xlu1 %v301_v19  ;;  %v162_v38 = vsel %vm146_vm4, %v562_v2, 0.0  ;;  %v310_v2 = vsel %vm46_vm0, %v461_v41, 0.0  ;;  %vm152_vm8 = vcmp.eq.s32.totalorder %v765_v48, %v124_v44  ;;  %470 = vpow2.f32 %v247_v3 }
  0xbb   :  { %v184_v5 = vsel %vm46_vm0, %v162_v38, 0.0  ;;  %v463_v47 = vpop.eup %462  ;;  %v168_v15 = vsel %vm152_vm8, %v608_v17, 0.0  ;;  %472 = vpow2.f32 %v251_v11 }
  0xbc   :  { %v109_v28 = vpop.permute.xlu1 %108  ;;  %179 = vadd.xlane.f32.xlu0 %v178_v24  ;;  %v313_v60 = vsel %vm46_vm0, %v463_v47, 0.0  ;;  %v465_v63 = vpop.eup %464  ;;  %v202_v24 = vsel %vm46_vm0, %v168_v15, 0.0 }
  0xbd   :  { %vm147_vm5 = vcmp.eq.s32.totalorder %v765_v48, %v109_v28  ;;  %v130_v56 = vpop.permute.xlu0 %129  ;;  %v467_v19 = vpop.eup %466 }
  0xbe   :  { %305 = vadd.xlane.f32.xlu1 %v304_v1  ;;  %v163_v45 = vsel %vm147_vm5, %v585_v10, 0.0  ;;  %vm154_vm9 = vcmp.eq.s32.totalorder %v765_v48, %v130_v56  ;;  %v274_v27 = vsel %vm46_vm0, %v467_v19, 0.0  ;;  %v469_v28 = vpop.eup %468 }
  0xbf   :  { %v187_v0 = vsel %vm46_vm0, %v163_v45, 0.0  ;;  %v277_v34 = vsel %vm46_vm0, %v469_v28, 0.0 }
  0xc0   :  { %v112_v37 = vpop.permute.xlu1 %111  ;;  %182 = vadd.xlane.f32.xlu0 %v181_v36 }
  0xc1   :  { %vm148_vm6 = vcmp.eq.s32.totalorder %v765_v48, %v112_v37  ;;  %v136_v12 = vpop.permute.xlu0 %135 }
  0xc2   :  { %308 = vadd.xlane.f32.xlu1 %v307_v40  ;;  %v164_v59 = vsel %vm148_vm6, %v580_v9, 0.0  ;;  %v316_v9 = vsel %vm46_vm0, %v465_v63, 0.0  ;;  %vm156_vm10 = vcmp.eq.s32.totalorder %v765_v48, %v136_v12 }
  0xc3   :  { %v190_v10 = vsel %vm46_vm0, %v164_v59, 0.0  ;;  %v172_v32 = vsel %vm156_vm10, %v636_v25, 0.0 }
  0xc4   :  { %185 = vadd.xlane.f32.xlu0 %v184_v5  ;;  %v115_v55 = vpop.permute.xlu1 %114  ;;  %v471_v36 = vpop.eup %470 }
  0xc5   :  { %vm149_vm7 = vcmp.eq.s32.totalorder %v765_v48, %v115_v55  ;;  %v142_v31 = vpop.permute.xlu0 %141  ;;  %v283_v40 = vsel %vm46_vm0, %v471_v36, 0.0  ;;  %v473_v41 = vpop.eup %472 }
  0xc6   :  { %311 = vadd.xlane.f32.xlu1 %v310_v2  ;;  %v165_v8 = vsel %vm149_vm7, %v599_v14, 0.0  ;;  %v170_v14 = vsel %vm154_vm9, %v622_v21, 0.0  ;;  %vm158_vm11 = vcmp.eq.s32.totalorder %v765_v48, %v142_v31  ;;  %v214_v21 = vsel %vm46_vm0, %v172_v32, 0.0 }
  0xc7   :  { %v193_v16 = vsel %vm46_vm0, %v165_v8, 0.0  ;;  %v208_v17 = vsel %vm46_vm0, %v170_v14, 0.0  ;;  %v174_v38 = vsel %vm158_vm11, %v650_v29, 0.0  ;;  %v289_v43 = vsel %vm46_vm0, %v473_v41, 0.0 }
  0xc8   :  { %188 = vadd.xlane.f32.xlu0 %v187_v0  ;;  %v118_v1 = vpop.permute.xlu1 %117  ;;  %v220_v25 = vsel %vm46_vm0, %v174_v38, 0.0 }
  0xc9   :  { %vm150_vm12 = vcmp.eq.s32.totalorder %v765_v48, %v118_v1 }
  0xca   :  { %314 = vadd.xlane.f32.xlu1 %v313_v60  ;;  %v166_v44 = vsel %vm150_vm12, %v594_v13, 0.0 }
  0xcb   :  { %v196_v5 = vsel %vm46_vm0, %v166_v44, 0.0 }
  0xcc   :  { %191 = vadd.xlane.f32.xlu0 %v190_v10  ;;  %v121_v37 = vpop.permute.xlu1 %120 }
  0xcd   :  { %vm151_vm13 = vcmp.eq.s32.totalorder %v765_v48, %v121_v37 }
  0xce   :  { %317 = vadd.xlane.f32.xlu1 %v316_v9  ;;  %v167_v45 = vsel %vm151_vm13, %v613_v18, 0.0 }
  0xcf   :  { %v199_v2 = vsel %vm46_vm0, %v167_v45, 0.0 }
  0xd0   :  { %194 = vadd.xlane.f32.xlu0 %v193_v16  ;;  %v127_v42 = vpop.permute.xlu1 %126 }
  0xd1   :  { %vm153_vm14 = vcmp.eq.s32.totalorder %v765_v48, %v127_v42 }
  0xd2   :  { %203 = vadd.xlane.f32.xlu1 %v202_v24  ;;  %v169_v47 = vsel %vm153_vm14, %v627_v22, 0.0 }
  0xd3   :  { %v205_v13 = vsel %vm46_vm0, %v169_v47, 0.0 }
  0xd4   :  { %275 = vadd.xlane.f32.xlu0 %v274_v27  ;;  %v133_v29 = vpop.permute.xlu1 %132 }
  0xd5   :  { %vm155_vm15 = vcmp.eq.s32.totalorder %v765_v48, %v133_v29 }
  0xd6   :  { %209 = vadd.xlane.f32.xlu1 %v208_v17  ;;  %v171_v52 = vsel %vm155_vm15, %v641_v26, 0.0 }
  0xd7   :  { %v211_v55 = vsel %vm46_vm0, %v171_v52, 0.0 }
  0xd8   :  { %278 = vadd.xlane.f32.xlu0 %v277_v34  ;;  %v139_v51 = vpop.permute.xlu1 %138 }
  0xd9   :  { %vm157_vm1 = vcmp.eq.s32.totalorder %v765_v48, %v139_v51 }
  0xda   :  { %215 = vadd.xlane.f32.xlu1 %v214_v21  ;;  %v173_v18 = vsel %vm157_vm1, %v655_v30, 0.0 }
  0xdb   :  { %v217_v0 = vsel %vm46_vm0, %v173_v18, 0.0 }
  0xdc   :  { %284 = vadd.xlane.f32.xlu0 %v283_v40 }
  0xde   :  { %221 = vadd.xlane.f32.xlu1 %v220_v25 }
  0xe0   :  { %290 = vadd.xlane.f32.xlu0 %v289_v43 }
  0xe4   :  { %197 = vadd.xlane.f32.xlu0 %v196_v5 }
  0xe8   :  { %200 = vadd.xlane.f32.xlu0 %v199_v2 }
  0xec   :  { %206 = vadd.xlane.f32.xlu0 %v205_v13 }
  0xf0   :  { %212 = vadd.xlane.f32.xlu0 %v211_v55 }
  0xf4   :  { %218 = vadd.xlane.f32.xlu0 %v217_v0 }
 0x12e   :  { %v273_v56 = vpop.xlane.xlu1 %272 }
 0x12f   :  { %474 = vlog2.f32 %v273_v56 }
 0x132   :  { %v282_v4 = vpop.xlane.xlu1 %281 }
 0x136   :  { %v288_v8 = vpop.xlane.xlu1 %287 }
 0x139   :  { %v475_v22 = vpop.eup %474 }
 0x13a   :  { %v320_v59 = vmul.f32 0.6931472, %v475_v22  ;;  %v294_v11 = vpop.xlane.xlu1 %293 }
 0x13c   :  { %v351_v60 = vadd.f32 %v320_v59, %v711_v50 }
 0x13f   :  { %v297_v15 = vpop.xlane.xlu1 %296 }
 0x143   :  { %v300_v19 = vpop.xlane.xlu1 %299 }
 0x145   :  { %v177_v63 = vpop.xlane.xlu0 %176 }
 0x146   :  { %v367_v3 = vsub.f32 %v177_v63, %v351_v60 }
 0x147   :  { %v303_v1 = vpop.xlane.xlu1 %302 }
 0x148   :  { %383 = vxpose.xlu0.b32.start [1/16] (narrow) %v367_v3, 8 }
 0x149   :  { %v180_v26 = vpop.xlane.xlu0 %179 }
 0x14b   :  { %v306_v34 = vpop.xlane.xlu1 %305 }
 0x14d   :  { %v183_v48 = vpop.xlane.xlu0 %182 }
 0x14f   :  { %v309_v42 = vpop.xlane.xlu1 %308 }
 0x151   :  { %v186_v10 = vpop.xlane.xlu0 %185 }
 0x153   :  { %v312_v2 = vpop.xlane.xlu1 %311 }
 0x155   :  { %v189_v9 = vpop.xlane.xlu0 %188 }
 0x157   :  { %v315_v55 = vpop.xlane.xlu1 %314 }
 0x159   :  { %v192_v30 = vpop.xlane.xlu0 %191 }
 0x15b   :  { %v318_v63 = vpop.xlane.xlu1 %317 }
 0x15d   :  { %v195_v12 = vpop.xlane.xlu0 %194 }
 0x161   :  { %v276_v16 = vpop.xlane.xlu0 %275 }
 0x162   :  { %476 = vlog2.f32 %v276_v16 }
 0x163   :  { %478 = vlog2.f32 %v282_v4 }
 0x165   :  { %v279_v24 = vpop.xlane.xlu0 %278 }
 0x166   :  { %480 = vlog2.f32 %v279_v24 }
 0x169   :  { %v285_v50 = vpop.xlane.xlu0 %284 }
 0x16a   :  { %482 = vlog2.f32 %v285_v50 }
 0x16b   :  { %484 = vlog2.f32 %v288_v8 }
 0x16c   :  { %v477_v14 = vpop.eup %476 }
 0x16d   :  { %v322_v27 = vmul.f32 0.6931472, %v477_v14  ;;  %v291_v28 = vpop.xlane.xlu0 %290  ;;  %v479_v31 = vpop.eup %478 }
 0x16e   :  { %486 = vlog2.f32 %v291_v28  ;;  %v326_v21 = vmul.f32 0.6931472, %v479_v31 }
 0x16f   :  { %v352_v17 = vadd.f32 %v322_v27, %v717_v54  ;;  %488 = vlog2.f32 %v294_v11 }
 0x170   :  { %v481_v32 = vpop.eup %480  ;;  %v354_v43 = vadd.f32 %v326_v21, %v715_v53  ;;  %490 = vlog2.f32 %v297_v15 }
 0x171   :  { %v368_v36 = vsub.f32 %v180_v26, %v352_v17  ;;  %v324_v37 = vmul.f32 0.6931472, %v481_v32  ;;  %492 = vlog2.f32 %v300_v19  ;;  %v198_v0 = vpop.xlane.xlu0 %197 }
 0x172   :  { %v370_v5 = vsub.f32 %v186_v10, %v354_v43  ;;  %494 = vlog2.f32 %v303_v1  ;;  %v204_v10 = vpop.xlane.xlu1 %203 }
 0x173   :  { %v353_v38 = vadd.f32 %v324_v37, %v709_v49  ;;  %384 = vxpose.xlu0.b32.cont [2/16] (narrow) %v368_v36, 8  ;;  %496 = vlog2.f32 %v306_v34 }
 0x174   :  { %v483_v40 = vpop.eup %482  ;;  %498 = vlog2.f32 %v309_v42 }
 0x175   :  { %v369_v41 = vsub.f32 %v183_v48, %v353_v38  ;;  %v328_v25 = vmul.f32 0.6931472, %v483_v40  ;;  %v485_v44 = vpop.eup %484  ;;  %v201_v3 = vpop.xlane.xlu0 %200  ;;  %500 = vlog2.f32 %v312_v2 }
 0x176   :  { %v330_v45 = vmul.f32 0.6931472, %v485_v44  ;;  %502 = vlog2.f32 %v315_v55  ;;  %v210_v19 = vpop.xlane.xlu1 %209 }
 0x177   :  { %385 = vxpose.xlu0.b32.cont [3/16] (narrow) %v369_v41, 8  ;;  %v355_v54 = vadd.f32 %v328_v25, %v723_v58  ;;  %504 = vlog2.f32 %v318_v63 }
 0x178   :  { %v487_v29 = vpop.eup %486  ;;  %v356_v51 = vadd.f32 %v330_v45, %v721_v57 }
 0x179   :  { %v371_v47 = vsub.f32 %v189_v9, %v355_v54  ;;  %v332_v49 = vmul.f32 0.6931472, %v487_v29  ;;  %v489_v13 = vpop.eup %488 }
 0x17a   :  { %v372_v52 = vsub.f32 %v192_v30, %v356_v51  ;;  %v334_v18 = vmul.f32 0.6931472, %v489_v13  ;;  %v491_v58 = vpop.eup %490  ;;  %v207_v30 = vpop.xlane.xlu0 %206 }
 0x17b   :  { %386 = vxpose.xlu0.b32.cont [4/16] (narrow) %v370_v5, 8  ;;  %v357_v53 = vadd.f32 %v332_v49, %v729_v62  ;;  %v336_v22 = vmul.f32 0.6931472, %v491_v58  ;;  %v493_v60 = vpop.eup %492 }
 0x17c   :  { %v358_v59 = vadd.f32 %v334_v18, %v727_v61  ;;  %v338_v26 = vmul.f32 0.6931472, %v493_v60  ;;  %v495_v4 = vpop.eup %494 }
 0x17d   :  { %v373_v56 = vsub.f32 %v195_v12, %v357_v53  ;;  %v359_v62 = vadd.f32 %v336_v22, %v735_v7  ;;  %v340_v8 = vmul.f32 0.6931472, %v495_v4  ;;  %v497_v11 = vpop.eup %496 }
 0x17e   :  { %v374_v57 = vsub.f32 %v198_v0, %v358_v59  ;;  %v360_v9 = vadd.f32 %v338_v26, %v733_v6  ;;  %v342_v12 = vmul.f32 0.6931472, %v497_v11  ;;  %v499_v16 = vpop.eup %498  ;;  %v213_v6 = vpop.xlane.xlu0 %212 }
 0x17f   :  { %387 = vxpose.xlu0.b32.cont [5/16] (narrow) %v371_v47, 8  ;;  %v375_v48 = vsub.f32 %v201_v3, %v359_v62  ;;  %v361_v15 = vadd.f32 %v340_v8, %v744_v23  ;;  %v344_v24 = vmul.f32 0.6931472, %v499_v16  ;;  %v501_v1 = vpop.eup %500  ;;  %v216_v23 = vpop.xlane.xlu1 %215 }
 0x180   :  { %v376_v61 = vsub.f32 %v204_v10, %v360_v9  ;;  %v362_v50 = vadd.f32 %v342_v12, %v742_v20  ;;  %v346_v27 = vmul.f32 0.6931472, %v501_v1  ;;  %v503_v31 = vpop.eup %502 }
 0x181   :  { %v377_v7 = vsub.f32 %v207_v30, %v361_v15  ;;  %v363_v28 = vadd.f32 %v344_v24, %v754_v35  ;;  %v505_v32 = vpop.eup %504  ;;  %v348_v34 = vmul.f32 0.6931472, %v503_v31 }
 0x182   :  { %v378_v14 = vsub.f32 %v210_v19, %v362_v50  ;;  %v364_v36 = vadd.f32 %v346_v27, %v751_v33  ;;  %v350_v37 = vmul.f32 0.6931472, %v505_v32  ;;  %v219_v38 = vpop.xlane.xlu0 %218 }
 0x183   :  { %388 = vxpose.xlu0.b32.cont [6/16] (narrow) %v372_v52, 8  ;;  %v379_v17 = vsub.f32 %v213_v6, %v363_v28  ;;  %v365_v20 = vadd.f32 %v348_v34, %v763_v46  ;;  %v222_v25 = vpop.xlane.xlu1 %221 }
 0x184   :  { %v380_v21 = vsub.f32 %v216_v23, %v364_v36  ;;  %v366_v40 = vadd.f32 %v350_v37, %v758_v39 }
 0x185   :  { %v381_v41 = vsub.f32 %v219_v38, %v365_v20 }
 0x186   :  { %v382_v35 = vsub.f32 %v222_v25, %v366_v40 }
 0x187   :  { %389 = vxpose.xlu0.b32.cont [7/16] (narrow) %v373_v56, 8 }
 0x18b   :  { %390 = vxpose.xlu0.b32.cont [8/16] (narrow) %v374_v57, 8 }
 0x18f   :  { %391 = vxpose.xlu0.b32.cont [9/16] (narrow) %v375_v48, 8 }
 0x193   :  { %392 = vxpose.xlu0.b32.cont [10/16] (narrow) %v376_v61, 8 }
 0x197   :  { %393 = vxpose.xlu0.b32.cont [11/16] (narrow) %v377_v7, 8 }
 0x19b   :  { %394 = vxpose.xlu0.b32.cont [12/16] (narrow) %v378_v14, 8 }
 0x19f   :  { %395 = vxpose.xlu0.b32.cont [13/16] (narrow) %v379_v17, 8 }
 0x1a3   :  { %396 = vxpose.xlu0.b32.cont [14/16] (narrow) %v380_v21, 8 }
 0x1a7   :  { %397 = vxpose.xlu0.b32.cont [15/16] (narrow) %v381_v41, 8 }
 0x1ab   :  { %398 = vxpose.xlu0.b32.end [16/16] (narrow) %v382_v35, 8 }
 0x1ef   :  { %v399_v42 = vpop.trf.xlu0 }
 0x1f0   :  { %v415_v43 = vmin.f32 %v399_v42, 0.0 }
 0x1f2   :  { %v416_v44 = vmul.f32 1.442695, %v415_v43 }
 0x1f4   :  { %506 = vpow2.f32 %v416_v44 }
 0x1fe   :  { %v507_v5 = vpop.eup %506 }
 0x1ff   :  { %v418_v33 = vsub.f32 1.0, %v507_v5 }
 0x201   :  { %v419_v54 = vmax.f32 %v418_v33, 0.0 }
 0x203   :  { %v420_v29 = vmul.f32 %v419_v54, %v419_v54 }
 0x205   :  { %v421_v45 = vmul.f32 %v420_v29, %v415_v43 }
 0x207   :  { %v422_v46 = vsub.f32 0.0, %v421_v45 }
 0x209   :  { %423 = vst [vmem:[#allocation2] sm:$0x1] %v422_v46 }
 0x20a   :  { %519 = shalt.err (!%p516_p4)
}
 0x20b   :  { %s520_s20 = scalar_lea.hbm %s869_s2, 16 }
 0x20c   :  { %p521_p5 = scmp.ne.s32.totalorder %s869_s2, %s520_s20  ;;  %p524_p6 = scmp.lt.u32.totalorder %s520_s20, %s869_s2 }
 0x20e   :  { %p526_p7 = pnand %p524_p6, %p521_p5 }
 0x210   :  { %529 = shalt.err (!%p526_p7)
}
 0x211   :  { %433 = dma.vmem_to_hbm [thread:$0]  %s431_s16, 16, %s869_s2, [#allocation3]  }
 0x212   :  { %530 = dma.done.wait [#allocation3], 16  }
 0x213   :  { %531 = vsyncadd [#allocation3], 4294967280 }
 0x214   :  { %437 = vsyncpa [#allocation3], 1 }

</bundles_post_ra>
